<compile_context>
chip_gen: v7x
topology: tpu7x:2x2x1
jax: 0.10.0
libtpu: 0.0.40
codegen_flags: <defaults>
</compile_context>

<pallas_src>
import functools
import math

import jax
import jax.numpy as jnp
from jax.experimental import pallas as pl
from jax.experimental.pallas import tpu as pltpu


def _pe_add_kernel(x_ref, pe_ref, o_ref):
    # x_ref: (tile_rows, tile_cols); pe_ref: (1, tile_cols) -> broadcast add.
    o_ref[...] = (x_ref[...] + pe_ref[...]).astype(o_ref.dtype)


def _pe_add_dropout_kernel(x_ref, pe_ref, bits_ref, o_ref, *, threshold, scale):
    y = x_ref[...] + pe_ref[...]
    # Inverted dropout: drop where bits < round(p * 2**32); scale survivors.
    keep = bits_ref[...] >= jnp.uint32(threshold)
    y = jnp.where(keep, y * jnp.asarray(scale, dtype=y.dtype), jnp.zeros_like(y))
    o_ref[...] = y.astype(o_ref.dtype)


def make_pe_table(max_len: int, d_model: int) -> jnp.ndarray:
    """Deterministic sinusoidal PE table, identical to the PyTorch __init__."""
    position = jnp.arange(0, max_len, dtype=jnp.float32)[:, None]            # (L, 1)
    div_term = jnp.exp(
        jnp.arange(0, d_model, 2, dtype=jnp.float32) * (-math.log(10000.0) / d_model)
    )                                                                         # (D/2,)
    pe = jnp.zeros((max_len, d_model), dtype=jnp.float32)
    pe = pe.at[:, 0::2].set(jnp.sin(position * div_term))
    pe = pe.at[:, 1::2].set(jnp.cos(position * div_term))
    return pe                                                                 # (L, D)


def _choose_tiles(num_rows, num_cols, itemsize, target_bytes=1 << 20):
    """Pick (row_tile, col_tile) for a (num_rows, num_cols) elementwise problem.

    Keeps the last (lane) axis dense and the per-block footprint ~target_bytes
    so double-buffered x / bits / out streams stay well inside default scoped
    VMEM on all TPU generations (incl. v7x's smaller VMEM).
    """
    col_budget = max(128, target_bytes // (8 * itemsize))
    if num_cols % 128 != 0 or num_cols * itemsize * 8 <= target_bytes:
        # Full width (equals the array dim -> always layout-legal).
        tc = num_cols
    else:
        tc = 128
        while num_cols % (tc * 2) == 0 and tc * 2 <= col_budget:
            tc *= 2
    rows_budget = max(1, target_bytes // (tc * itemsize))
    if num_rows <= rows_budget:
        tr = num_rows
    else:
        tr = max(8, (rows_budget // 8) * 8)
    return tr, tc


def positional_encoding_forward(x, pe, *, p=0.1, train=False, rng=None):
    """x: (B, S, D) with S <= pe.shape[0]. Returns same shape/dtype as x."""
    B, S, D = x.shape
    max_len, d_model = pe.shape
    assert S <= max_len and D == d_model, "seq_len must be <= max_len"

    N = S * D
    x2 = x.reshape(B, N)                                   # lane-dense rows
    pe_slab = pe[:S].reshape(1, N).astype(x.dtype)         # (1, N), resident

    tr, tc = _choose_tiles(B, N, jnp.dtype(x.dtype).itemsize)
    grid = (pl.cdiv(N, tc), pl.cdiv(B, tr))                # rows innermost

    x_spec = pl.BlockSpec((tr, tc), lambda c, r: (r, c))
    pe_spec = pl.BlockSpec((1, tc), lambda c, r: (0, c))   # constant across r
    out_spec = pl.BlockSpec((tr, tc), lambda c, r: (r, c))

    use_dropout = bool(train) and float(p) > 0.0
    if use_dropout:
        if rng is None:
            rng = jax.random.PRNGKey(0)
        bits = jax.random.bits(rng, (B, N), dtype=jnp.uint32)
        threshold = min(int(round(float(p) * (1 << 32))), (1 << 32) - 1)
        scale = 1.0 / (1.0 - float(p))
        kernel = functools.partial(
            _pe_add_dropout_kernel, threshold=threshold, scale=scale
        )
        in_specs = [x_spec, pe_spec, x_spec]               # bits tiled like x
        args = (x2, pe_slab, bits)
    else:
        kernel = _pe_add_kernel
        in_specs = [x_spec, pe_spec]
        args = (x2, pe_slab)

    compiler_params = None
    if jax.default_backend() == "tpu":
        # Both grid axes are independent -> shard across v7x's 2 TensorCores.
        compiler_params = pltpu.CompilerParams(
            dimension_semantics=("parallel", "parallel")
        )

    out2 = pl.pallas_call(
        kernel,
        out_shape=jax.ShapeDtypeStruct((B, N), x.dtype),
        grid=grid,
        in_specs=in_specs,
        out_specs=out_spec,
        compiler_params=compiler_params,
    )(*args)
    return out2.reshape(B, S, D)


if __name__ == "__main__":
    # Small shapes consistent with the module defaults: d_model=32, max_len=25,
    # batch=2, seq_len == max_len (what the PyTorch broadcast requires).
    B, MAX_LEN, D_MODEL = 2, 25, 32
    P_DROP = 0.1

    key = jax.random.PRNGKey(0)
    x = jax.random.normal(key, (B, MAX_LEN, D_MODEL), dtype=jnp.float32)
    pe = make_pe_table(MAX_LEN, D_MODEL)

    # Eval-mode forward (dropout is identity): must match x + pe exactly.
    out_eval = positional_encoding_forward(x, pe, p=P_DROP, train=False)
    out_eval = jax.block_until_ready(out_eval)
    ref = x + pe[None, :, :]
    assert out_eval.shape == x.shape and out_eval.dtype == x.dtype
    assert jnp.allclose(out_eval, ref, atol=1e-6, rtol=1e-6)

    # Training-mode forward exercises the in-kernel dropout path.
    out_train = positional_encoding_forward(
        x, pe, p=P_DROP, train=True, rng=jax.random.PRNGKey(1234)
    )
    out_train = jax.block_until_ready(out_train)
    # Every surviving element equals (x+pe)/(1-p); dropped elements are 0.
    scaled = ref * jnp.float32(1.0 / (1.0 - P_DROP))
    ok = jnp.logical_or(
        jnp.isclose(out_train, 0.0, atol=1e-6),
        jnp.isclose(out_train, scaled, atol=1e-5, rtol=1e-5),
    )
    assert bool(jnp.all(ok))
    # Drop fraction should be roughly p (deterministic given the fixed key).
    frac_dropped = float(jnp.mean(jnp.isclose(out_train, 0.0, atol=1e-6)))
    assert 0.01 < frac_dropped < 0.3

    print("KERNEL_OK")
</pallas_src>

<mosaic_0001>
module attributes {stable_mosaic.version = 11 : i64} {
  func.func @_pe_add_kernel(%arg0: i32, %arg1: i32, %arg2: memref<2x800xf32, #tpu.memory_space<vmem>>, %arg3: memref<1x800xf32, #tpu.memory_space<vmem>>, %arg4: memref<2x800xf32, #tpu.memory_space<vmem>>) attributes {dimension_semantics = [#tpu.dimension_semantics<arbitrary>, #tpu.dimension_semantics<arbitrary>], iteration_bounds = array<i64: 1, 1>, scalar_prefetch = 0 : i64, scratch_operands = 0 : i64, tpu.core_type = #tpu.core_type<tc>, window_params = [{transform_indices = @transform_0, window_bounds = array<i64: 2, 800>}, {transform_indices = @transform_1, window_bounds = array<i64: 1, 800>}, {transform_indices = @transform_2, window_bounds = array<i64: 2, 800>}]} {
    %c0 = arith.constant 0 : index
    %c0_0 = arith.constant 0 : index
    %0 = vector.load %arg2[%c0, %c0_0] : memref<2x800xf32, #tpu.memory_space<vmem>>, vector<2x800xf32>
    %c0_1 = arith.constant 0 : index
    %c0_2 = arith.constant 0 : index
    %1 = vector.load %arg3[%c0_1, %c0_2] : memref<1x800xf32, #tpu.memory_space<vmem>>, vector<1x800xf32>
    %2 = vector.broadcast %1 : vector<1x800xf32> to vector<2x800xf32>
    %3 = arith.addf %0, %2 : vector<2x800xf32>
    %c0_3 = arith.constant 0 : index
    %c0_4 = arith.constant 0 : index
    %4 = vector.load %arg4[%c0_3, %c0_4] : memref<2x800xf32, #tpu.memory_space<vmem>>, vector<2x800xf32>
    tpu.vector_store %arg4[%c0_3, %c0_4], %3 {strides = array<i32>} : memref<2x800xf32, #tpu.memory_space<vmem>>, vector<2x800xf32>,
    return
  }
  func.func @transform_0(%arg0: i32, %arg1: i32) -> (i32, i32) {
    %c0_i32 = arith.constant 0 : i32
    return %arg1, %arg0 : i32, i32
  }
  func.func @transform_1(%arg0: i32, %arg1: i32) -> (i32, i32) {
    %c0_i32 = arith.constant 0 : i32
    %c0_i32_0 = arith.constant 0 : i32
    return %c0_i32, %arg0 : i32, i32
  }
  func.func @transform_2(%arg0: i32, %arg1: i32) -> (i32, i32) {
    %c0_i32 = arith.constant 0 : i32
    return %arg1, %arg0 : i32, i32
  }
}

</mosaic_0001>

<bundles_post_ra>
// kernel: tpu_custom_call.1
= control target key start
LH: loop header
LB: loop body
LE: loop exit
PB: predicated region body
PF: predicated region fallthrough
CT: control target
= control target key end

     0   :  { %7 = vsyncpa [#allocation3], 0  ;;  %s259_s0 = inlined_call_operand.hbm [shape: f32[2,800], index: 0, kind: input, shape index: {}]   ;;  %s260_s1 = inlined_call_operand.hbm [shape: f32[1,800], index: 1, kind: input, shape index: {}]   ;;  %s261_s2 = inlined_call_operand.hbm [shape: f32[2,800], index: 2, kind: output, shape index: {}]  }
   0x1   :  { %8 = vsyncpa [#allocation6], 0 }
   0x2   :  { %9 = vsyncpa [#allocation4], 0  ;;  %s204_s9 = smov [#allocation2]   ;;  %s205_s11 = smov [#allocation5]  }
   0x3   :  { %s16_s10 = sshll.u32 %s204_s9, 4  ;;  %s26_s12 = sshll.u32 %s205_s11, 4  ;;  %s17_s10 = int_to_ptr.vmem [resolvable:$true] %s16_s10  ;;  %s27_s12 = int_to_ptr.vmem [resolvable:$true] %s26_s12 }
   0x4   :  { %s132_s15 = scalar_lea.hbm %s259_s0, 224 }
   0x5   :  { %p133_p0 = scmp.ne.s32.totalorder %s259_s0, %s132_s15  ;;  %p136_p1 = scmp.lt.u32.totalorder %s132_s15, %s259_s0 }
   0x7   :  { %p138_p2 = pnand %p136_p1, %p133_p0 }
   0x9   :  { %141 = shalt.err (!%p138_p2)
}
   0xa   :  { %s142_s20 = scalar_lea.vmem %s17_s10, 224  ;;  %p147_p4 = scmp.lt.s32.totalorder %s17_s10, %s17_s10 }
   0xb   :  { %p143_p3 = scmp.ne.s32.totalorder %s17_s10, %s142_s20  ;;  %p148_p5 = scmp.lt.s32.totalorder %s142_s20, %s142_s20 }
   0xd   :  { %p149_p6 = por %p148_p5, %p147_p4 }
   0xf   :  { %p150_p7 = pnand %p149_p6, %p143_p3 }
  0x11   :  { %153 = shalt.err (!%p150_p7)
}
  0x12   :  { %19 = dma.hbm_to_vmem [thread:$0]  %s259_s0, 224, %s17_s10, [#allocation3]  }
  0x13   :  { %s154_s25 = scalar_lea.hbm %s260_s1, 112 }
  0x14   :  { %p155_p8 = scmp.ne.s32.totalorder %s260_s1, %s154_s25  ;;  %p158_p9 = scmp.lt.u32.totalorder %s154_s25, %s260_s1 }
  0x16   :  { %p160_p10 = pnand %p158_p9, %p155_p8 }
  0x18   :  { %163 = shalt.err (!%p160_p10)
}
  0x19   :  { %s164_s30 = scalar_lea.vmem %s27_s12, 112  ;;  %s168_s3 = scalar_lea.vmem %s27_s12, 128 }
  0x1a   :  { %p165_p11 = scmp.ne.s32.totalorder %s27_s12, %s164_s30  ;;  %p169_p12 = scmp.lt.s32.totalorder %s27_s12, %s27_s12 }
  0x1b   :  { %p170_p13 = scmp.lt.s32.totalorder %s168_s3, %s164_s30 }
  0x1d   :  { %p171_p0 = por %p170_p13, %p169_p12 }
  0x1f   :  { %p172_p1 = pnand %p171_p0, %p165_p11 }
  0x21   :  { %175 = shalt.err (!%p172_p1)
}
  0x22   :  { %29 = dma.hbm_to_vmem [thread:$0]  %s260_s1, 112, %s27_s12, [#allocation6]  }
  0x23   :  { %198 = dma.done.wait [#allocation3], 224  }
  0x24   :  { %199 = vsyncadd [#allocation3], 4294967072 }
  0x25   :  { %200 = dma.done.wait [#allocation6], 112  }
  0x26   :  { %201 = vsyncadd [#allocation6], 4294967184  ;;  %v40_v0 = vlaneseq  ;;  %v206_v1 = vmov 1983009808   ;;  %v38_v12 = vld [vmem:[#allocation5] sm:$0x7f] }
  0x27   :  { %v71_v2 = vunpack.c.l.s4 %v206_v1  ;;  %vm106_vm0 = vcmask 1041408   ;;  %vm107_vm1 = vcmask 1043458   ;;  %v36_v27 = vld [vmem:[#allocation2] sm:$0xff]  ;;  %vm109_vm3 = vcmask 259076   ;;  %v37_v30 = vld [vmem:[#allocation2 + $0x8] sm:$0x3f] }
  0x28   :  { %v41_v3 = vshrl.u32 %v40_v0, 7  ;;  %vm108_vm2 = vmor %vm107_vm1, %vm106_vm0  ;;  %s207_s1 = smov [#allocation7]  }
  0x29   :  { %v72_v4 = vunpack.c.0.s8 %v71_v2  ;;  %s118_s5 = sshll.u32 %s207_s1, 4  ;;  %vm110_vm4 = vmor %vm109_vm3, %vm108_vm2  ;;  %s119_s5 = int_to_ptr.vmem [resolvable:$true] %s118_s5 }
  0x2a   :  { %v42_v5 = vsub.s32 0, %v41_v3  ;;  %v46_v6 = vsub.s32 1, %v41_v3  ;;  %v50_v7 = vsub.s32 2, %v41_v3  ;;  %v54_v8 = vsub.s32 3, %v41_v3  ;;  %s176_s6 = scalar_lea.vmem %s119_s5, 224  ;;  %p181_p3 = scmp.lt.s32.totalorder %s119_s5, %s119_s5 }
  0x2b   :  { %v58_v9 = vsub.s32 4, %v41_v3  ;;  %v62_v10 = vsub.s32 5, %v41_v3  ;;  %v66_v11 = vsub.s32 6, %v41_v3  ;;  %v75_v13 = vsub.s32 %v72_v4, %v41_v3  ;;  %p177_p2 = scmp.ne.s32.totalorder %s119_s5, %s176_s6  ;;  %p182_p4 = scmp.lt.s32.totalorder %s176_s6, %s176_s6 }
  0x2c   :  { %v43_v14 = vrot.slane %v38_v12, %v42_v5  ;;  %v47_v15 = vrot.slane %v38_v12, %v46_v6  ;;  %v51_v16 = vrot.slane %v38_v12, %v50_v7  ;;  %v55_v17 = vrot.slane %v38_v12, %v54_v8 }
  0x2d   :  { %v59_v18 = vrot.slane %v38_v12, %v58_v9  ;;  %v63_v19 = vrot.slane %v38_v12, %v62_v10  ;;  %v67_v20 = vrot.slane %v38_v12, %v66_v11  ;;  %p183_p5 = por %p182_p4, %p181_p3 }
  0x2e   :  { %v68_v21 = vcombine.low %v43_v14, %v47_v15  ;;  %v69_v22 = vcombine.low %v51_v16, %v55_v17 }
  0x2f   :  { %v85_v23 = vcombine.low %v59_v18, %v63_v19  ;;  %v99_v24 = vrot.slane %v67_v20, %v75_v13  ;;  %p184_p6 = pnand %p183_p5, %p177_p2 }
  0x30   :  { %v76_v25 = vrot.slane %v68_v21, %v75_v13  ;;  %v83_v26 = vrot.slane %v69_v22, %v75_v13 }
  0x31   :  { %v92_v28 = vrot.slane %v85_v23, %v75_v13 }
  0x32   :  { %v84_v29 = vcombine.low %v76_v25, %v83_v26 }
  0x33   :  { %v100_v31 = vcombine.low %v92_v28, %v99_v24 }
  0x34   :  { %v103_v32 = vadd.f32 %v84_v29, %v36_v27 }
  0x35   :  { %v104_v33 = vadd.f32 %v100_v31, %v37_v30 }
  0x36   :  { %105 = vst [vmem:[#allocation7] sm:$0xff] %v103_v32 }
  0x37   :  { %111 = vst.msk [vmem:[#allocation7 + $0x8] sm:$0x3f] %vm110_vm4, %v104_v33 }
  0x38   :  { %187 = shalt.err (!%p184_p6)
}
  0x39   :  { %s188_s9 = scalar_lea.hbm %s261_s2, 224 }
  0x3a   :  { %p189_p7 = scmp.ne.s32.totalorder %s261_s2, %s188_s9  ;;  %p192_p8 = scmp.lt.u32.totalorder %s188_s9, %s261_s2 }
  0x3c   :  { %p194_p9 = pnand %p192_p8, %p189_p7 }
  0x3e   :  { %197 = shalt.err (!%p194_p9)
}
  0x3f   :  { %121 = dma.vmem_to_hbm [thread:$0]  %s119_s5, 224, %s261_s2, [#allocation4]  }
  0x40   :  { %202 = dma.done.wait [#allocation4], 224  }
  0x41   :  { %203 = vsyncadd [#allocation4], 4294967072 }
  0x42   :  { %125 = vsyncpa [#allocation3], 1 }
  0x43   :  { %126 = vsyncpa [#allocation6], 1 }
  0x44   :  { %127 = vsyncpa [#allocation4], 1 }

</bundles_post_ra>
